<compile_context>
chip_gen: v7x
topology: tpu7x:2x2x1
jax: 0.10.0
libtpu: 0.0.40
codegen_flags: <defaults>
</compile_context>

<pallas_src>
import functools

import jax
import jax.numpy as jnp
from jax import lax
from jax.experimental import pallas as pl
from jax.experimental.pallas import tpu as pltpu

block_size = 16   # T
head_size = 32
n_embd = 64       # C
dropout = 0.4     # nn.Dropout on attention weights; eval-mode identity here


def _head_kernel(x_ref, w_ref, o_ref, *, scale, hs, T):
    # x_ref: (M, C)      f32   one batch tile, rows already flattened (M = b_tile*T)
    # w_ref: (C, 3*hs)   bf16  fused [Wk | Wq | Wv] (cast in wrapper)
    # o_ref: (M, hs)     f32
    M, C = x_ref.shape

    # Fused projection: single tall MXU GEMM over the whole tile.
    x2d = x_ref[...].astype(jnp.bfloat16)
    kqv = jnp.dot(x2d, w_ref[...],
                  preferred_element_type=jnp.float32)                    # (M, 3*hs) f32

    k = kqv[:, 0 * hs:1 * hs].astype(jnp.bfloat16)                       # (M, hs)
    q = kqv[:, 1 * hs:2 * hs].astype(jnp.bfloat16)
    v = kqv[:, 2 * hs:3 * hs].astype(jnp.bfloat16)

    # Attention scores as ONE flattened MXU matmul (transposed contraction
    # folded by Mosaic; no explicit k.T / vxpose).  Scale uses C = n_embd,
    # exactly mirroring the PyTorch module's `* C ** (-0.5)`.
    wei = jnp.einsum("md,nd->mn", q, k,
                     preferred_element_type=jnp.float32) * scale         # (M, M) f32

    # Combined block-diagonal (per batch element) AND causal mask from 2-D
    # iotas -- equivalent to tril(ones(T, T)) applied per batch element.
    row = lax.broadcasted_iota(jnp.int32, (M, M), 0)
    col = lax.broadcasted_iota(jnp.int32, (M, M), 1)
    mask = (lax.div(row, T) == lax.div(col, T)) & (row >= col)
    wei = jnp.where(mask, wei, -jnp.inf)

    # Numerically stable softmax over the last axis, in f32.  Every row keeps
    # at least its diagonal entry, so the row max is finite.
    m = jnp.max(wei, axis=-1, keepdims=True)
    e = jnp.exp(wei - m)
    s = jnp.sum(e, axis=-1, keepdims=True)
    p = e * pl.reciprocal(s, approx=True)                                # EUP vrcp

    # TODO(synk): nn.Dropout(0.4) on the attention weights is stochastic;
    # implemented as identity (eval mode).

    out = jnp.dot(p.astype(jnp.bfloat16), v,
                  preferred_element_type=jnp.float32)                    # (M, hs) f32
    o_ref[...] = out.astype(o_ref.dtype)


def _pick_b_tile(B, T, max_rows=256):
    """Largest divisor of B with b_tile*T <= max_rows.

    At small sizes this collapses the grid to a single step: the grid is a
    sequential loop on v5e/v6e, so splitting only adds ~0.35 us/step plus a
    second weight fetch while shrinking the GEMM M.  The grid only splits once
    each step holds >= max_rows rows, which is also the point where v7x's
    second TensorCore has enough work for the 'parallel' split to pay off."""
    bt = max(1, min(B, max_rows // T))
    while B % bt:
        bt -= 1
    return bt


def head_forward(x, wk, wq, wv, *, b_tile=None):
    """Single-head causal self-attention forward (eval mode, no dropout).

    x:  (B, T, C) float32
    wk, wq, wv: (C, head_size) float32  (pre-transposed Linear weights)
    returns: (B, T, head_size) float32
    """
    B, T, C = x.shape
    hs = wk.shape[1]
    scale = C ** (-0.5)      # faithful to the module: `wei * C ** (-0.5)`

    if b_tile is None:
        b_tile = _pick_b_tile(B, T)
    assert B % b_tile == 0

    # Fuse the three projection weights into one lane-dense (C, 3*hs) matrix
    # and cast to bf16 here (fuses into the concatenate; halves weight DMA).
    w = jnp.concatenate([wk, wq, wv], axis=1).astype(jnp.bfloat16)

    # Flatten (B, T) into the matmul M dimension (free contiguous reshape).
    x2d = x.reshape(B * T, C)

    kernel = functools.partial(_head_kernel, scale=scale, hs=hs, T=T)

    out2d = pl.pallas_call(
        kernel,
        out_shape=jax.ShapeDtypeStruct((B * T, hs), x.dtype),
        grid_spec=pltpu.PrefetchScalarGridSpec(
            num_scalar_prefetch=0,
            grid=(B // b_tile,),
            in_specs=[
                pl.BlockSpec((b_tile * T, C), lambda b: (b, 0)),
                pl.BlockSpec((C, 3 * hs), lambda b: (0, 0)),
            ],
            out_specs=pl.BlockSpec((b_tile * T, hs), lambda b: (b, 0)),
        ),
        compiler_params=pltpu.CompilerParams(
            dimension_semantics=("parallel",)),
    )(x2d, w)

    return out2d.reshape(B, T, hs)


def _reference(x, wk, wq, wv):
    """Pure-JAX f32 reference mirroring the PyTorch forward (eval mode)."""
    B, T, C = x.shape
    k = x @ wk
    q = x @ wq
    v = x @ wv
    wei = jnp.einsum("btd,bsd->bts", q, k) * (C ** -0.5)
    mask = jnp.tril(jnp.ones((T, T), dtype=bool))
    wei = jnp.where(mask, wei, -jnp.inf)
    wei = jax.nn.softmax(wei, axis=-1)
    return wei @ v


if __name__ == "__main__":
    key = jax.random.PRNGKey(0)
    kx, kk, kq, kv = jax.random.split(key, 4)

    # Shapes consistent with the module constants; B=8, T=16 -> flattened
    # M = 128 rows in a single grid step.
    B, T, C, hs = 8, block_size, n_embd, head_size

    x = jax.random.normal(kx, (B, T, C), dtype=jnp.float32)
    # Deterministic "Linear(n_embd, head_size, bias=False)" weights,
    # stored already transposed to (n_embd, head_size).
    bound = 1.0 / (C ** 0.5)
    wk = jax.random.uniform(kk, (C, hs), jnp.float32, -bound, bound)
    wq = jax.random.uniform(kq, (C, hs), jnp.float32, -bound, bound)
    wv = jax.random.uniform(kv, (C, hs), jnp.float32, -bound, bound)

    out = jax.block_until_ready(head_forward(x, wk, wq, wv))

    ref = _reference(x, wk, wq, wv)
    assert out.shape == (B, T, hs)
    # Looser tolerance: kernel uses bf16 matmul operands (f32 accumulation)
    # and an approximate EUP reciprocal for the softmax denominator.
    assert jnp.allclose(out, ref, atol=3e-2, rtol=3e-2), "mismatch vs reference"

    print("KERNEL_OK")
</pallas_src>

<mosaic_0001>
module attributes {stable_mosaic.version = 11 : i64} {
  func.func @_head_kernel(%arg0: i32, %arg1: memref<128x64xf32, #tpu.memory_space<vmem>>, %arg2: memref<64x96xbf16, #tpu.memory_space<vmem>>, %arg3: memref<128x32xf32, #tpu.memory_space<vmem>>) attributes {dimension_semantics = [#tpu.dimension_semantics<parallel>], iteration_bounds = array<i64: 1>, scalar_prefetch = 0 : i64, scratch_operands = 0 : i64, tpu.core_type = #tpu.core_type<tc>, window_params = [{transform_indices = @transform_0, window_bounds = array<i64: 128, 64>}, {pipeline_mode = #tpu.pipeline_mode<synchronous>, transform_indices = @transform_1, window_bounds = array<i64: 64, 96>}, {transform_indices = @transform_2, window_bounds = array<i64: 128, 32>}]} {
    %c0 = arith.constant 0 : index
    %c0_0 = arith.constant 0 : index
    %0 = vector.load %arg1[%c0, %c0_0] : memref<128x64xf32, #tpu.memory_space<vmem>>, vector<128x64xf32>
    %1 = arith.truncf %0 : vector<128x64xf32> to vector<128x64xbf16>
    %c0_1 = arith.constant 0 : index
    %c0_2 = arith.constant 0 : index
    %2 = vector.load %arg2[%c0_1, %c0_2] : memref<64x96xbf16, #tpu.memory_space<vmem>>, vector<64x96xbf16>
    %cst = arith.constant dense<0.000000e+00> : vector<128x96xf32>
    %3 = tpu.matmul %1, %2, %cst {dimension_numbers = #tpu.dot_dimension_numbers<[1], [0], [0], [1], [0, 0, 1, 1], [], []>} : vector<128x64xbf16>, vector<64x96xbf16>, vector<128x96xf32> -> vector<128x96xf32>
    %4 = vector.extract_strided_slice %3 {offsets = [0, 0], sizes = [128, 32], strides = [1, 1]} : vector<128x96xf32> to vector<128x32xf32>
    %5 = arith.truncf %4 : vector<128x32xf32> to vector<128x32xbf16>
    %6 = vector.extract_strided_slice %3 {offsets = [0, 32], sizes = [128, 32], strides = [1, 1]} : vector<128x96xf32> to vector<128x32xf32>
    %7 = arith.truncf %6 : vector<128x32xf32> to vector<128x32xbf16>
    %8 = vector.extract_strided_slice %3 {offsets = [0, 64], sizes = [128, 32], strides = [1, 1]} : vector<128x96xf32> to vector<128x32xf32>
    %9 = arith.truncf %8 : vector<128x32xf32> to vector<128x32xbf16>
    "tpu.trace_start"() <{level = 10 : i32, message = "md,nd->mn"}> : () -> ()
    %cst_3 = arith.constant dense<0.000000e+00> : vector<128x128xf32>
    %10 = tpu.matmul %7, %5, %cst_3 {dimension_numbers = #tpu.dot_dimension_numbers<[1], [1], [0], [0], [0, 0, 1, 0], [], []>} : vector<128x32xbf16>, vector<128x32xbf16>, vector<128x128xf32> -> vector<128x128xf32>
    "tpu.trace_stop"() : () -> ()
    %cst_4 = arith.constant 1.250000e-01 : f32
    %11 = vector.broadcast %cst_4 : f32 to vector<128x128xf32>
    %12 = arith.mulf %10, %11 : vector<128x128xf32>
    %13 = tpu.iota {dimensions = array<i32: 0>} : vector<128x128xi32>
    %14 = tpu.iota {dimensions = array<i32: 1>} : vector<128x128xi32>
    %c16_i32 = arith.constant 16 : i32
    %15 = vector.broadcast %c16_i32 : i32 to vector<128x128xi32>
    %16 = arith.divsi %13, %15 : vector<128x128xi32>
    %c16_i32_5 = arith.constant 16 : i32
    %17 = vector.broadcast %c16_i32_5 : i32 to vector<128x128xi32>
    %18 = arith.divsi %14, %17 : vector<128x128xi32>
    %19 = arith.cmpi eq, %16, %18 : vector<128x128xi32>
    %20 = arith.cmpi sge, %13, %14 : vector<128x128xi32>
    %21 = arith.andi %19, %20 : vector<128x128xi1>
    %cst_6 = arith.constant 0xFF800000 : f32
    %22 = vector.broadcast %cst_6 : f32 to vector<128x128xf32>
    %23 = arith.select %21, %12, %22 : vector<128x128xi1>, vector<128x128xf32>
    %cst_7 = arith.constant dense<0xFF800000> : vector<128xf32>
    %24 = vector.multi_reduction <maximumf>, %23, %cst_7 [1] : vector<128x128xf32> to vector<128xf32>
    %25 = vector.shape_cast %24 : vector<128xf32> to vector<128x1xf32>
    %26 = vector.broadcast %25 : vector<128x1xf32> to vector<128x128xf32>
    %27 = arith.subf %23, %26 : vector<128x128xf32>
    %28 = math.exp %27 : vector<128x128xf32>
    %cst_8 = arith.constant dense<0.000000e+00> : vector<128xf32>
    %29 = vector.multi_reduction <add>, %28, %cst_8 [1] : vector<128x128xf32> to vector<128xf32>
    %30 = vector.shape_cast %29 : vector<128xf32> to vector<128x1xf32>
    %31 = tpu.reciprocal %30 {approx = true} : vector<128x1xf32> -> vector<128x1xf32>
    %32 = vector.broadcast %31 : vector<128x1xf32> to vector<128x128xf32>
    %33 = arith.mulf %28, %32 : vector<128x128xf32>
    %34 = arith.truncf %33 : vector<128x128xf32> to vector<128x128xbf16>
    %cst_9 = arith.constant dense<0.000000e+00> : vector<128x32xf32>
    %35 = tpu.matmul %34, %9, %cst_9 {dimension_numbers = #tpu.dot_dimension_numbers<[1], [0], [0], [1], [0, 0, 1, 1], [], []>} : vector<128x128xbf16>, vector<128x32xbf16>, vector<128x32xf32> -> vector<128x32xf32>
    %c0_10 = arith.constant 0 : index
    %c0_11 = arith.constant 0 : index
    %36 = vector.load %arg3[%c0_10, %c0_11] : memref<128x32xf32, #tpu.memory_space<vmem>>, vector<128x32xf32>
    tpu.vector_store %arg3[%c0_10, %c0_11], %35 {strides = array<i32>} : memref<128x32xf32, #tpu.memory_space<vmem>>, vector<128x32xf32>,
    return
  }
  func.func @transform_0(%arg0: i32) -> (i32, i32) {
    %c0_i32 = arith.constant 0 : i32
    %c0_i32_0 = arith.constant 0 : i32
    return %arg0, %c0_i32 : i32, i32
  }
  func.func @transform_1(%arg0: i32) -> (i32, i32) {
    %c0_i32 = arith.constant 0 : i32
    %c0_i32_0 = arith.constant 0 : i32
    %c0_i32_1 = arith.constant 0 : i32
    return %c0_i32, %c0_i32_0 : i32, i32
  }
  func.func @transform_2(%arg0: i32) -> (i32, i32) {
    %c0_i32 = arith.constant 0 : i32
    %c0_i32_0 = arith.constant 0 : i32
    return %arg0, %c0_i32 : i32, i32
  }
}

</mosaic_0001>

<bundles_post_ra>
// kernel: tpu_custom_call.1
= control target key start
LH: loop header
LB: loop body
LE: loop exit
PB: predicated region body
PF: predicated region fallthrough
CT: control target
= control target key end

     0   :  { %vm68_vm0 = vcmask 523264   ;;  %vm222_vm1 = vcmask 261120   ;;  %s1109_s20 = smov 96   ;;  %s1562_s1 = inlined_call_operand.vmem [shape: bf16[64,96], index: 1, kind: input, shape index: {}]   ;;  %s1563_s0 = inlined_call_operand.vmem [shape: f32[128,64], index: 0, kind: input, shape index: {}]   ;;  %s1564_s2 = inlined_call_operand.vmem [shape: f32[128,32], index: 2, kind: output, shape index: {}]  }
   0x1   :  { %v1041_v0 = vld [vmem:[%s1562_s1] sm:$0xff]   ;;  %v1042_v1 = vld [vmem:[%s1562_s1 + $0x8] sm:$0xff]   ;;  %v1043_v2 = vld [vmem:[%s1562_s1 + $0x10] sm:$0xff]  }
   0x2   :  { %943 = vmatprep.subr.bf16.mxu0 %v1041_v0  ;;  %v12_v3 = vld [vmem:[%s1563_s0] sm:$0xff]  ;;  %v13_v4 = vld [vmem:[%s1563_s0 + $0x8] sm:$0xff]  ;;  %v1044_v6 = vld [vmem:[%s1562_s1 + $0x18] sm:$0xff]  }
   0x3   :  { %944 = vmatpush3.bf16.msra.mxu0 %v1041_v0  ;;  %v28_v5 = vpack.c.bf16 %v13_v4, %v12_v3  ;;  %v14_v7 = vld [vmem:[%s1563_s0 + $0x10] sm:$0xff]  ;;  %v15_v8 = vld [vmem:[%s1563_s0 + $0x18] sm:$0xff]  ;;  %v16_v9 = vld [vmem:[%s1563_s0 + $0x20] sm:$0xff] }
   0x4   :  { %945 = vmatprep.subr.bf16.mxu0 %v1042_v1  ;;  %v17_v10 = vld [vmem:[%s1563_s0 + $0x28] sm:$0xff]  ;;  %v29_v11 = vpack.c.bf16 %v15_v8, %v14_v7  ;;  %v18_v13 = vld [vmem:[%s1563_s0 + $0x30] sm:$0xff]  ;;  %v19_v14 = vld [vmem:[%s1563_s0 + $0x38] sm:$0xff] }
   0x5   :  { %951 = vmatprep.mubr.msk.bf16.mxu0 %vm68_vm0, %v28_v5  ;;  %v30_v12 = vpack.c.bf16 %v17_v10, %v16_v9  ;;  %v20_v15 = vld [vmem:[%s1563_s0 + $0x40] sm:$0xff]  ;;  %v21_v16 = vld [vmem:[%s1563_s0 + $0x48] sm:$0xff]  ;;  %v31_v17 = vpack.c.bf16 %v19_v14, %v18_v13  ;;  %v22_v19 = vld [vmem:[%s1563_s0 + $0x50] sm:$0xff]  ;;  %v384_v5 = vlaneseq }
   0x6   :  { %v32_v18 = vpack.c.bf16 %v21_v16, %v20_v15  ;;  %v23_v20 = vld [vmem:[%s1563_s0 + $0x58] sm:$0xff]  ;;  %v24_v21 = vld [vmem:[%s1563_s0 + $0x60] sm:$0xff]  ;;  %v25_v22 = vld [vmem:[%s1563_s0 + $0x68] sm:$0xff] }
   0x7   :  { %946 = vmatpush3.bf16.msra.mxu0 %v1042_v1  ;;  %v33_v23 = vpack.c.bf16 %v23_v20, %v22_v19  ;;  %v34_v24 = vpack.c.bf16 %v25_v22, %v24_v21  ;;  %v26_v25 = vld [vmem:[%s1563_s0 + $0x70] sm:$0xff]  ;;  %v27_v26 = vld [vmem:[%s1563_s0 + $0x78] sm:$0xff]  ;;  %s1110_s0 = smov 64   ;;  %v1265_v8 = vand.u32 127, %v384_v5 }
   0x8   :  { %947 = vmatprep.subr.bf16.mxu0 %v1043_v2  ;;  %v35_v27 = vpack.c.bf16 %v27_v26, %v26_v25 }
   0xb   :  { %948 = vmatpush3.bf16.msra.mxu0 %v1043_v2 }
   0xc   :  { %949 = vmatprep.subr.bf16.mxu0 %v1044_v6 }
   0xf   :  { %950 = vmatpush3.bf16.msra.mxu0 %v1044_v6  ;;  %v1262_v6 = vshrl.u32 %v384_v5, 7 }
  0x11   :  { %v387_v7 = vadd.s32 16, %v1262_v6  ;;  %v386_v9 = vadd.s32 8, %v1262_v6  ;;  %v406_v14 = vshrl.u32 %v1262_v6, 4  ;;  %v391_v15 = vadd.s32 48, %v1262_v6 }
  0x12   :  { %952 = vmatmul.mubr.msk.bf16.vlgmr.msra.gmra.mrb[0].mxu0 %vm68_vm0, %v29_v11  ;;  %v1269_v11 = vshrl.u32 %v1265_v8, 4  ;;  %v392_v19 = vadd.s32 56, %v1262_v6  ;;  %vm538_vm8 = vcmp.ge.s32.totalorder %v1262_v6, %v1265_v8 }
  0x13   :  { %955 = vmatprep.mubr.msk.bf16.mxu0 %vm68_vm0, %v30_v12  ;;  %v420_v10 = vshrl.u32 %v387_v7, 4  ;;  %v388_v12 = vadd.s32 24, %v1262_v6  ;;  %v413_v13 = vshrl.u32 %v386_v9, 4  ;;  %vm540_vm3 = vcmp.ge.s32.totalorder %v387_v7, %v1265_v8 }
  0x14   :  { %vm539_vm6 = vcmp.ge.s32.totalorder %v386_v9, %v1265_v8  ;;  %vm522_vm7 = vcmp.eq.s32.totalorder %v406_v14, %v1269_v11  ;;  %v448_v22 = vshrl.u32 %v391_v15, 4  ;;  %vm544_vm14 = vcmp.ge.s32.totalorder %v391_v15, %v1265_v8 }
  0x15   :  { %vm524_vm2 = vcmp.eq.s32.totalorder %v420_v10, %v1269_v11  ;;  %v427_v16 = vshrl.u32 %v388_v12, 4  ;;  %vm523_vm5 = vcmp.eq.s32.totalorder %v413_v13, %v1269_v11  ;;  %vm554_vm11 = vmand %vm522_vm7, %vm538_vm8  ;;  %vm541_vm12 = vcmp.ge.s32.totalorder %v388_v12, %v1265_v8 }
  0x16   :  { %vm556_vm4 = vmand %vm524_vm2, %vm540_vm3  ;;  %vm528_vm13 = vcmp.eq.s32.totalorder %v448_v22, %v1269_v11 }
  0x17   :  { %vm555_vm9 = vmand %vm523_vm5, %vm539_vm6  ;;  %vm1286_vm10 = vcmp.eq.s32.totalorder %v427_v16, %v1269_v11  ;;  %vm545_vm5 = vcmp.ge.s32.totalorder %v392_v19, %v1265_v8 }
  0x18   :  { %vm1303_vm15 = vmand %vm1286_vm10, %vm541_vm12 }
  0x19   :  { %vm560_vm2 = vmand %vm528_vm13, %vm544_vm14 }
  0x1a   :  { %956 = vmatmul.mubr.msk.bf16.gmra.mrb[4].mxu0 %vm68_vm0, %v31_v17  ;;  %v389_v17 = vadd.s32 32, %v1262_v6 }
  0x1b   :  { %959 = vmatprep.mubr.msk.bf16.mxu0 %vm68_vm0, %v32_v18 }
  0x1c   :  { %vm542_vm3 = vcmp.ge.s32.totalorder %v389_v17, %v1265_v8 }
  0x22   :  { %960 = vmatmul.mubr.msk.bf16.gmra.mrb[8].mxu0 %vm68_vm0, %v33_v23 }
  0x23   :  { %963 = vmatprep.mubr.msk.bf16.mxu0 %vm68_vm0, %v34_v24 }
  0x2a   :  { %964 = vmatmul.mubr.msk.bf16.gmra.mrb[12].mxu0 %vm68_vm0, %v35_v27 }
  0xe5   :  { %v953_v28 = vpop.f32.mrb[0].mxu0 }
  0xe6   :  { %v127_v29 = vpop.f32.mrb[1].mxu0 }
  0xe7   :  { %v954_v30 = vpop.f32.mrb[2].mxu0 }
  0xe8   :  { %v1194_v31 = vpack.c.bf16 %v954_v30, %v953_v28  ;;  %v130_v32 = vpop.f32.mrb[3].mxu0  ;;  %v434_v28 = vshrl.u32 %v389_v17, 4  ;;  %v455_v30 = vshrl.u32 %v392_v19, 4 }
  0xe9   :  { %v190_v33 = vpack.c.bf16 %v130_v32, %v127_v29  ;;  %v390_v32 = vadd.s32 40, %v1262_v6 }
  0xea   :  { %v251_v41 = vsel %vm222_vm1, %v1194_v31, 0  ;;  %vm1308_vm0 = vcmp.eq.s32.totalorder %v434_v28, %v1269_v11 }
  0xeb   :  { %206 = vrot.lane.b32.xlu0 %v190_v33, %s1109_s20  ;;  %1031 = vmatprep.subr.msk.bf16.mxu1 %vm222_vm1, %v190_v33  ;;  %v248_v34 = vsel %vm222_vm1, %v190_v33, 0  ;;  %vm558_vm6 = vmand %vm1308_vm0, %vm542_vm3 }
  0xec   :  { %968 = vmatpush3.bf16.xpose.msra.mxu1 %v248_v34 }
  0xed   :  { %v957_v35 = vpop.f32.mrb[4].mxu0  ;;  %1032 = vmatprep.subr.msk.bf16.mxu1 %vm222_vm1, %v1194_v31 }
  0xee   :  { %v143_v36 = vpop.f32.mrb[5].mxu0 }
  0xef   :  { %208 = vrot.lane.b32.xlu0 %v1194_v31, %s1109_s20  ;;  %v958_v37 = vpop.f32.mrb[6].mxu0 }
  0xf0   :  { %v1203_v38 = vpack.c.bf16 %v958_v37, %v957_v35  ;;  %v146_v39 = vpop.f32.mrb[7].mxu0 }
  0xf1   :  { %v1205_v40 = vpack.c.bf16 %v146_v39, %v143_v36  ;;  %v398_v39 = vadd.s32 104, %v1262_v6 }
  0xf2   :  { %v257_v55 = vsel %vm222_vm1, %v1203_v38, 0 }
  0xf3   :  { %210 = vrot.lane.b32.xlu1 %v1205_v40, %s1109_s20  ;;  %v254_v48 = vsel %vm222_vm1, %v1205_v40, 0 }
  0xf4   :  { %970 = vmatpush3.bf16.xpose.msra.mxu1 %v251_v41 }
  0xf5   :  { %1033 = vmatprep.subr.msk.bf16.mxu1 %vm222_vm1, %v1205_v40  ;;  %v961_v42 = vpop.f32.mrb[8].mxu0 }
  0xf6   :  { %v159_v43 = vpop.f32.mrb[9].mxu0 }
  0xf7   :  { %212 = vrot.lane.b32.xlu1 %v1203_v38, %s1109_s20  ;;  %v962_v44 = vpop.f32.mrb[10].mxu0 }
  0xf8   :  { %v1215_v45 = vpack.c.bf16 %v962_v44, %v961_v42  ;;  %v162_v46 = vpop.f32.mrb[11].mxu0  ;;  %v393_v44 = vadd.s32 64, %v1262_v6 }
  0xf9   :  { %v1217_v47 = vpack.c.bf16 %v162_v46, %v159_v43  ;;  %v441_v43 = vshrl.u32 %v390_v32, 4 }
  0xfa   :  { %v263_v57 = vsel %vm222_vm1, %v1215_v45, 0 }
  0xfb   :  { %216 = vrot.lane.b32.xlu1 %v1215_v45, %s1109_s20  ;;  %214 = vrot.lane.b32.xlu0 %v1217_v47, %s1109_s20  ;;  %v260_v56 = vsel %vm222_vm1, %v1217_v47, 0  ;;  %vm527_vm8 = vcmp.eq.s32.totalorder %v441_v43, %v1269_v11 }
  0xfc   :  { %972 = vmatpush3.bf16.xpose.msra.mxu1 %v254_v48 }
  0xfd   :  { %1034 = vmatprep.subr.msk.bf16.mxu1 %vm222_vm1, %v1203_v38  ;;  %v965_v49 = vpop.f32.mrb[12].mxu0 }
  0xfe   :  { %v175_v50 = vpop.f32.mrb[13].mxu0 }
  0xff   :  { %v966_v51 = vpop.f32.mrb[14].mxu0 }
 0x100   :  { %v1227_v52 = vpack.c.bf16 %v966_v51, %v965_v49  ;;  %v178_v53 = vpop.f32.mrb[15].mxu0 }
 0x101   :  { %v1229_v54 = vpack.c.bf16 %v178_v53, %v175_v50  ;;  %v396_v50 = vadd.s32 88, %v1262_v6 }
 0x102   :  { %220 = vrot.lane.b32.xlu1 %v1227_v52, %s1109_s20  ;;  %v269_v59 = vsel %vm222_vm1, %v1227_v52, 0 }
 0x103   :  { %218 = vrot.lane.b32.xlu0 %v1229_v54, %s1109_s20  ;;  %v266_v58 = vsel %vm222_vm1, %v1229_v54, 0 }
 0x104   :  { %974 = vmatpush3.bf16.xpose.msra.mxu1 %v257_v55 }
 0x105   :  { %1035 = vmatprep.subr.msk.bf16.mxu1 %vm222_vm1, %v1217_v47 }
 0x106   :  { %738 = vrot.lane.b32.xlu1 %v190_v33, %s1110_s0  ;;  %v395_v33 = vadd.s32 80, %v1262_v6 }
 0x108   :  { %v476_v49 = vshrl.u32 %v395_v33, 4 }
 0x10a   :  { %vm532_vm10 = vcmp.eq.s32.totalorder %v476_v49, %v1269_v11 }
 0x10c   :  { %976 = vmatpush3.bf16.xpose.msra.mxu1 %v260_v56 }
 0x10d   :  { %1036 = vmatprep.subr.msk.bf16.mxu1 %vm222_vm1, %v1215_v45 }
 0x114   :  { %978 = vmatpush3.bf16.xpose.msra.mxu1 %v263_v57 }
 0x115   :  { %1037 = vmatprep.subr.msk.bf16.mxu1 %vm222_vm1, %v1229_v54 }
 0x11c   :  { %980 = vmatpush3.bf16.xpose.msra.mxu1 %v266_v58 }
 0x11d   :  { %1038 = vmatprep.subr.msk.bf16.mxu1 %vm222_vm1, %v1227_v52 }
 0x124   :  { %982 = vmatpush3.bf16.xpose.msra.mxu1 %v269_v59  ;;  %v462_v59 = vshrl.u32 %v393_v44, 4 }
 0x126   :  { %vm1354_vm14 = vcmp.eq.s32.totalorder %v462_v59, %v1269_v11 }
 0x15d   :  { %v207_v60 = vpop.permute.xlu0 %206 }
 0x15e   :  { %983 = vmatprep.mubr.msk.bf16.mxu1 %vm222_vm1, %v207_v60  ;;  %v394_v60 = vadd.s32 72, %v1262_v6 }
 0x160   :  { %v469_v7 = vshrl.u32 %v394_v60, 4 }
 0x161   :  { %v209_v61 = vpop.permute.xlu0 %208 }
 0x162   :  { %984 = vmatmul.mubr.msk.bf16.vlgmr.msra.gmra.mrb[0].mxu1 %vm222_vm1, %v209_v61  ;;  %v483_v61 = vshrl.u32 %v396_v50, 4 }
 0x164   :  { %vm533_vm0 = vcmp.eq.s32.totalorder %v483_v61, %v1269_v11 }
 0x165   :  { %v211_v62 = vpop.permute.xlu1 %210 }
 0x166   :  { %987 = vmatprep.mubr.msk.bf16.mxu1 %vm222_vm1, %v211_v62  ;;  %v399_v62 = vadd.s32 112, %v1262_v6 }
 0x168   :  { %v504_v12 = vshrl.u32 %v399_v62, 4 }
 0x169   :  { %v213_v63 = vpop.permute.xlu1 %212 }
 0x16a   :  { %988 = vmatmul.mubr.msk.bf16.gmra.mrb[4].mxu1 %vm222_vm1, %v213_v63  ;;  %v397_v63 = vadd.s32 96, %v1262_v6 }
 0x16c   :  { %v490_v14 = vshrl.u32 %v397_v63, 4 }
 0x16d   :  { %v215_v0 = vpop.permute.xlu0 %214  ;;  %v217_v1 = vpop.permute.xlu1 %216 }
 0x16e   :  { %991 = vmatprep.mubr.msk.bf16.mxu1 %vm222_vm1, %v215_v0 }
 0x172   :  { %992 = vmatmul.mubr.msk.bf16.gmra.mrb[8].mxu1 %vm222_vm1, %v217_v1 }
 0x174   :  { %v221_v2 = vpop.permute.xlu1 %220 }
 0x175   :  { %v219_v3 = vpop.permute.xlu0 %218 }
 0x176   :  { %995 = vmatprep.mubr.msk.bf16.mxu1 %vm222_vm1, %v219_v3 }
 0x178   :  { %v739_v4 = vpop.permute.xlu1 %738 }
 0x179   :  { %999 = vmatprep.subr.bf16.mxu0 %v739_v4 }
 0x17a   :  { %996 = vmatmul.mubr.msk.bf16.gmra.mrb[12].mxu1 %vm222_vm1, %v221_v2  ;;  %1000 = vmatpush3.bf16.msra.mxu0 %v739_v4 }
 0x235   :  { %v985_v18 = vpop.f32.mrb[0].mxu1 }
 0x236   :  { %v370_v20 = vmul.f32 0.125, %v985_v18  ;;  %v305_v21 = vpop.f32.mrb[1].mxu1 }
 0x237   :  { %v986_v23 = vpop.f32.mrb[2].mxu1  ;;  %v368_v24 = vmul.f32 0.125, %v305_v21 }
 0x238   :  { %v308_v25 = vpop.f32.mrb[3].mxu1  ;;  %v1283_v26 = vsel %vm556_vm4, %v370_v20, -inf  ;;  %v371_v35 = vmul.f32 0.125, %v986_v23  ;;  %vm1315_vm4 = vcmp.eq.s32.totalorder %v455_v30, %v1269_v11 }
 0x239   :  { %v369_v29 = vmul.f32 0.125, %v308_v25  ;;  %590 = vmax.xlane.f32.xlu0 %v1283_v26  ;;  %v1299_v36 = vsel %vm554_vm11, %v368_v24, -inf  ;;  %vm561_vm7 = vmand %vm1315_vm4, %vm545_vm5  ;;  %vm548_vm11 = vcmp.ge.s32.totalorder %v395_v33, %v1265_v8  ;;  %vm531_vm5 = vcmp.eq.s32.totalorder %v469_v7, %v1269_v11 }
 0x23a   :  { %v1324_v57 = vsel %vm1303_vm15, %v371_v35, -inf  ;;  %vm564_vm13 = vmand %vm532_vm10, %vm548_vm11  ;;  %vm546_vm15 = vcmp.ge.s32.totalorder %v393_v44, %v1265_v8  ;;  %vm534_vm11 = vcmp.eq.s32.totalorder %v490_v14, %v1269_v11  ;;  %v400_v35 = vadd.s32 120, %v1262_v6 }
 0x23b   :  { %v1296_v34 = vsel %vm555_vm9, %v369_v29, -inf  ;;  %vm543_vm9 = vcmp.ge.s32.totalorder %v390_v32, %v1265_v8  ;;  %vm562_vm3 = vmand %vm1354_vm14, %vm546_vm15 }
 0x23c   :  { %588 = vmax.xlane.f32.xlu1 %v1296_v34  ;;  %vm1347_vm12 = vmand %vm527_vm8, %vm543_vm9  ;;  %vm552_vm8 = vcmp.ge.s32.totalorder %v399_v62, %v1265_v8  ;;  %vm550_vm9 = vcmp.ge.s32.totalorder %v397_v63, %v1265_v8  ;;  %v511_v37 = vshrl.u32 %v400_v35, 4  ;;  %vm553_vm15 = vcmp.ge.s32.totalorder %v400_v35, %v1265_v8 }
 0x23d   :  { %586 = vmax.xlane.f32.xlu0 %v1299_v36  ;;  %v989_v41 = vpop.f32.mrb[4].mxu1 }
 0x23e   :  { %v374_v46 = vmul.f32 0.125, %v989_v41  ;;  %v321_v48 = vpop.f32.mrb[5].mxu1  ;;  %vm537_vm14 = vcmp.eq.s32.totalorder %v511_v37, %v1269_v11 }
 0x23f   :  { %v990_v51 = vpop.f32.mrb[6].mxu1  ;;  %v372_v53 = vmul.f32 0.125, %v321_v48 }
 0x240   :  { %v375_v55 = vmul.f32 0.125, %v990_v51  ;;  %v324_v56 = vpop.f32.mrb[7].mxu1  ;;  %v1326_v58 = vsel %vm560_vm2, %v374_v46, -inf  ;;  %vm549_vm2 = vcmp.ge.s32.totalorder %v396_v50, %v1265_v8 }
 0x241   :  { %592 = vmax.xlane.f32.xlu0 %v1324_v57  ;;  %598 = vmax.xlane.f32.xlu1 %v1326_v58  ;;  %v373_v0 = vmul.f32 0.125, %v324_v56  ;;  %v1343_v1 = vsel %vm558_vm6, %v372_v53, -inf  ;;  %vm565_vm4 = vmand %vm533_vm0, %vm549_vm2  ;;  %vm547_vm6 = vcmp.ge.s32.totalorder %v394_v60, %v1265_v8 }
 0x242   :  { %v1345_v2 = vsel %vm561_vm7, %v375_v55, -inf  ;;  %vm536_vm7 = vcmp.eq.s32.totalorder %v504_v12, %v1269_v11  ;;  %vm563_vm10 = vmand %vm531_vm5, %vm547_vm6 }
 0x243   :  { %v1363_v18 = vsel %vm1347_vm12, %v373_v0, -inf  ;;  %vm568_vm12 = vmand %vm536_vm7, %vm552_vm8 }
 0x244   :  { %vm569_vm0 = vmand %vm537_vm14, %vm553_vm15 }
 0x245   :  { %594 = vmax.xlane.f32.xlu1 %v1343_v1  ;;  %600 = vmax.xlane.f32.xlu0 %v1345_v2  ;;  %v993_v4 = vpop.f32.mrb[8].mxu1 }
 0x246   :  { %v378_v9 = vmul.f32 0.125, %v993_v4  ;;  %v337_v10 = vpop.f32.mrb[9].mxu1 }
 0x247   :  { %v994_v13 = vpop.f32.mrb[10].mxu1  ;;  %v376_v15 = vmul.f32 0.125, %v337_v10 }
 0x248   :  { %v379_v16 = vmul.f32 0.125, %v994_v13  ;;  %v340_v17 = vpop.f32.mrb[11].mxu1  ;;  %v1365_v19 = vsel %vm564_vm13, %v378_v9, -inf  ;;  %vm566_vm13 = vmand %vm534_vm11, %vm550_vm9 }
 0x249   :  { %596 = vmax.xlane.f32.xlu0 %v1363_v18  ;;  %606 = vmax.xlane.f32.xlu1 %v1365_v19  ;;  %v377_v20 = vmul.f32 0.125, %v340_v17  ;;  %v1376_v21 = vsel %vm562_vm3, %v376_v15, -inf  ;;  %vm551_vm3 = vcmp.ge.s32.totalorder %v398_v39, %v1265_v8 }
 0x24a   :  { %v1378_v22 = vsel %vm565_vm4, %v379_v16, -inf }
 0x24b   :  { %v1383_v29 = vsel %vm563_vm10, %v377_v20, -inf }
 0x24d   :  { %602 = vmax.xlane.f32.xlu1 %v1376_v21  ;;  %608 = vmax.xlane.f32.xlu0 %v1378_v22  ;;  %v997_v23 = vpop.f32.mrb[12].mxu1 }
 0x24e   :  { %v382_v24 = vmul.f32 0.125, %v997_v23  ;;  %v353_v25 = vpop.f32.mrb[13].mxu1 }
 0x24f   :  { %v380_v27 = vmul.f32 0.125, %v353_v25  ;;  %v998_v28 = vpop.f32.mrb[14].mxu1 }
 0x250   :  { %v1385_v30 = vsel %vm568_vm12, %v382_v24, -inf  ;;  %v356_v32 = vpop.f32.mrb[15].mxu1 }
 0x251   :  { %604 = vmax.xlane.f32.xlu0 %v1383_v29  ;;  %614 = vmax.xlane.f32.xlu1 %v1385_v30  ;;  %v1389_v33 = vsel %vm566_vm13, %v380_v27, -inf }
 0x255   :  { %610 = vmax.xlane.f32.xlu1 %v1389_v33 }
 0x266   :  { %740 = vrot.lane.b32.xlu1 %v1194_v31, %s1110_s0  ;;  %v497_v31 = vshrl.u32 %v398_v39, 4 }
 0x267   :  { %742 = vrot.lane.b32.xlu0 %v1205_v40, %s1110_s0  ;;  %v383_v40 = vmul.f32 0.125, %v998_v28 }
 0x268   :  { %vm535_vm2 = vcmp.eq.s32.totalorder %v497_v31, %v1269_v11 }
 0x269   :  { %vm567_vm4 = vmand %vm535_vm2, %vm551_vm3 }
 0x26a   :  { %744 = vrot.lane.b32.xlu1 %v1203_v38, %s1110_s0  ;;  %v381_v38 = vmul.f32 0.125, %v356_v32 }
 0x26b   :  { %746 = vrot.lane.b32.xlu0 %v1217_v47, %s1110_s0  ;;  %v1408_v47 = vsel %vm569_vm0, %v383_v40, -inf }
 0x26e   :  { %750 = vrot.lane.b32.xlu1 %v1229_v54, %s1110_s0  ;;  %v1411_v54 = vsel %vm567_vm4, %v381_v38, -inf }
 0x28a   :  { %616 = vmax.xlane.f32.xlu0 %v1408_v47 }
 0x28e   :  { %612 = vmax.xlane.f32.xlu0 %v1411_v54 }
 0x2a4   :  { %748 = vrot.lane.b32.xlu0 %v1215_v45, %s1110_s0 }
 0x2c6   :  { %v591_v6 = vpop.xlane.xlu0 %590 }
 0x2c7   :  { %v620_v41 = vsub.f32 %v1283_v26, %v591_v6 }
 0x2c9   :  { %v638_v42 = vmul.f32 1.442695, %v620_v41  ;;  %v589_v11 = vpop.xlane.xlu1 %588 }
 0x2ca   :  { %v587_v43 = vpop.xlane.xlu0 %586  ;;  %v619_v46 = vsub.f32 %v1296_v34, %v589_v11 }
 0x2cb   :  { %1045 = vpow2.f32 %v638_v42  ;;  %v618_v8 = vsub.f32 %v1299_v36, %v587_v43 }
 0x2cc   :  { %v636_v55 = vmul.f32 1.442695, %v619_v46 }
 0x2cd   :  { %v634_v44 = vmul.f32 1.442695, %v618_v8 }
 0x2ce   :  { %v593_v48 = vpop.xlane.xlu0 %592  ;;  %v599_v49 = vpop.xlane.xlu1 %598 }
 0x2cf   :  { %1047 = vpow2.f32 %v634_v44  ;;  %v621_v50 = vsub.f32 %v1324_v57, %v593_v48  ;;  %v624_v51 = vsub.f32 %v1326_v58, %v599_v49 }
 0x2d1   :  { %v640_v45 = vmul.f32 1.442695, %v621_v50  ;;  %v646_v53 = vmul.f32 1.442695, %v624_v51 }
 0x2d2   :  { %v595_v26 = vpop.xlane.xlu1 %594  ;;  %v601_v56 = vpop.xlane.xlu0 %600 }
 0x2d3   :  { %1049 = vpow2.f32 %v640_v45  ;;  %v622_v59 = vsub.f32 %v1343_v1, %v595_v26  ;;  %v625_v36 = vsub.f32 %v1345_v2, %v601_v56 }
 0x2d4   :  { %1051 = vpow2.f32 %v646_v53 }
 0x2d5   :  { %v1423_v60 = vpop.eup %1045  ;;  %v642_v34 = vmul.f32 1.442695, %v622_v59  ;;  %1053 = vpow2.f32 %v636_v55  ;;  %v648_v58 = vmul.f32 1.442695, %v625_v36 }
 0x2d6   :  { %v597_v61 = vpop.xlane.xlu0 %596  ;;  %v607_v62 = vpop.xlane.xlu1 %606  ;;  %670 = vadd.xlane.f32.xlu0 %v1423_v60 }
 0x2d7   :  { %1055 = vpow2.f32 %v642_v34  ;;  %v623_v57 = vsub.f32 %v1363_v18, %v597_v61  ;;  %v628_v63 = vsub.f32 %v1365_v19, %v607_v62 }
 0x2d9   :  { %v1428_v0 = vpop.eup %1047  ;;  %v644_v1 = vmul.f32 1.442695, %v623_v57  ;;  %v654_v2 = vmul.f32 1.442695, %v628_v63 }
 0x2da   :  { %v603_v3 = vpop.xlane.xlu1 %602  ;;  %v609_v4 = vpop.xlane.xlu0 %608  ;;  %666 = vadd.xlane.f32.xlu0 %v1428_v0 }
 0x2db   :  { %1057 = vpow2.f32 %v644_v1  ;;  %v626_v5 = vsub.f32 %v1376_v21, %v603_v3  ;;  %v629_v17 = vsub.f32 %v1378_v22, %v609_v4 }
 0x2dc   :  { %1059 = vpow2.f32 %v648_v58 }
 0x2dd   :  { %v1432_v7 = vpop.eup %1049  ;;  %1061 = vpow2.f32 %v654_v2  ;;  %v650_v16 = vmul.f32 1.442695, %v626_v5  ;;  %v656_v23 = vmul.f32 1.442695, %v629_v17 }
 0x2de   :  { %v1434_v9 = vpop.eup %1051  ;;  %v605_v10 = vpop.xlane.xlu0 %604  ;;  %672 = vadd.xlane.f32.xlu0 %v1432_v7 }
 0x2df   :  { %v615_v12 = vpop.xlane.xlu1 %614  ;;  %v627_v13 = vsub.f32 %v1383_v29, %v605_v10  ;;  %678 = vadd.xlane.f32.xlu1 %v1434_v9  ;;  %v1440_v15 = vpop.eup %1053 }
 0x2e0   :  { %v632_v14 = vsub.f32 %v1385_v30, %v615_v12 }
 0x2e1   :  { %v1443_v18 = vpop.eup %1055  ;;  %v652_v19 = vmul.f32 1.442695, %v627_v13 }
 0x2e2   :  { %668 = vadd.xlane.f32.xlu0 %v1440_v15  ;;  %v662_v21 = vmul.f32 1.442695, %v632_v14  ;;  %v743_v22 = vpop.permute.xlu0 %742 }
 0x2e3   :  { %v611_v20 = vpop.xlane.xlu1 %610  ;;  %1063 = vpow2.f32 %v652_v19  ;;  %674 = vadd.xlane.f32.xlu1 %v1443_v18 }
 0x2e4   :  { %1065 = vpow2.f32 %v650_v16  ;;  %v630_v24 = vsub.f32 %v1389_v33, %v611_v20 }
 0x2e5   :  { %v1448_v25 = vpop.eup %1057  ;;  %1067 = vpow2.f32 %v662_v21 }
 0x2e6   :  { %v1450_v27 = vpop.eup %1059  ;;  %676 = vadd.xlane.f32.xlu0 %v1448_v25  ;;  %1069 = vpow2.f32 %v656_v23  ;;  %v658_v29 = vmul.f32 1.442695, %v630_v24  ;;  %v747_v37 = vpop.permute.xlu0 %746 }
 0x2e7   :  { %v741_v28 = vpop.permute.xlu1 %740  ;;  %680 = vadd.xlane.f32.xlu1 %v1450_v27  ;;  %v1454_v30 = vpop.eup %1061 }
 0x2e8   :  { %1001 = vmatprep.subr.bf16.mxu0 %v741_v28  ;;  %1071 = vpow2.f32 %v658_v29 }
 0x2e9   :  { %1002 = vmatpush3.bf16.msra.mxu0 %v741_v28 }
 0x2ea   :  { %1003 = vmatprep.subr.bf16.mxu0 %v743_v22 }
 0x2eb   :  { %686 = vadd.xlane.f32.xlu1 %v1454_v30  ;;  %v745_v32 = vpop.permute.xlu1 %744 }
 0x2ed   :  { %1004 = vmatpush3.bf16.msra.mxu0 %v743_v22  ;;  %v1457_v33 = vpop.eup %1063 }
 0x2ee   :  { %1005 = vmatprep.subr.bf16.mxu0 %v745_v32  ;;  %v1459_v35 = vpop.eup %1065  ;;  %684 = vadd.xlane.f32.xlu0 %v1457_v33 }
 0x2ef   :  { %682 = vadd.xlane.f32.xlu1 %v1459_v35  ;;  %v1463_v39 = vpop.eup %1067  ;;  %v751_v44 = vpop.permute.xlu1 %750 }
 0x2f0   :  { %v1465_v31 = vpop.eup %1069 }
 0x2f1   :  { %1006 = vmatpush3.bf16.msra.mxu0 %v745_v32 }
 0x2f2   :  { %1007 = vmatprep.subr.bf16.mxu0 %v747_v37  ;;  %694 = vadd.xlane.f32.xlu0 %v1463_v39  ;;  %v1469_v40 = vpop.eup %1071 }
 0x2f3   :  { %688 = vadd.xlane.f32.xlu1 %v1465_v31 }
 0x2f5   :  { %1008 = vmatpush3.bf16.msra.mxu0 %v747_v37 }
 0x2f7   :  { %690 = vadd.xlane.f32.xlu1 %v1469_v40 }
 0x317   :  { %v617_v38 = vpop.xlane.xlu0 %616 }
 0x318   :  { %v633_v6 = vsub.f32 %v1408_v47, %v617_v38 }
 0x31a   :  { %v664_v41 = vmul.f32 1.442695, %v633_v6 }
 0x31b   :  { %v613_v42 = vpop.xlane.xlu0 %612 }
 0x31c   :  { %1073 = vpow2.f32 %v664_v41  ;;  %v631_v11 = vsub.f32 %v1411_v54, %v613_v42 }
 0x31e   :  { %v660_v43 = vmul.f32 1.442695, %v631_v11 }
 0x31f   :  { %v749_v8 = vpop.permute.xlu0 %748 }
 0x320   :  { %1075 = vpow2.f32 %v660_v43  ;;  %1009 = vmatprep.subr.bf16.mxu0 %v749_v8 }
 0x321   :  { %1010 = vmatpush3.bf16.msra.mxu0 %v749_v8 }
 0x322   :  { %1011 = vmatprep.subr.bf16.mxu0 %v751_v44 }
 0x325   :  { %1012 = vmatpush3.bf16.msra.mxu0 %v751_v44 }
 0x326   :  { %v1474_v46 = vpop.eup %1073 }
 0x327   :  { %696 = vadd.xlane.f32.xlu1 %v1474_v46 }
 0x32a   :  { %v1477_v48 = vpop.eup %1075 }
 0x32b   :  { %692 = vadd.xlane.f32.xlu0 %v1477_v48 }
 0x341   :  { %752 = vrot.lane.b32.xlu0 %v1227_v52, %s1110_s0 }
 0x363   :  { %v671_v47 = vpop.xlane.xlu0 %670 }
 0x364   :  { %1077 = vrcp.f32 %v671_v47 }
 0x367   :  { %v667_v54 = vpop.xlane.xlu0 %666 }
 0x36b   :  { %v673_v49 = vpop.xlane.xlu0 %672 }
 0x36c   :  { %1079 = vrcp.f32 %v673_v49  ;;  %v679_v61 = vpop.xlane.xlu1 %678 }
 0x36d   :  { %1081 = vrcp.f32 %v667_v54 }
 0x36e   :  { %v1078_v51 = vpop.eup %1077 }
 0x36f   :  { %v669_v50 = vpop.xlane.xlu0 %668  ;;  %v716_v53 = vmul.f32 %v1078_v51, %v1423_v60 }
 0x370   :  { %1083 = vrcp.f32 %v669_v50  ;;  %v675_v62 = vpop.xlane.xlu1 %674 }
 0x373   :  { %v677_v58 = vpop.xlane.xlu0 %676 }
 0x374   :  { %v681_v57 = vpop.xlane.xlu1 %680  ;;  %1085 = vrcp.f32 %v677_v58 }
 0x375   :  { %1087 = vrcp.f32 %v675_v62 }
 0x376   :  { %v1080_v45 = vpop.eup %1079  ;;  %1089 = vrcp.f32 %v681_v57 }
 0x377   :  { %v717_v55 = vmul.f32 %v1080_v45, %v1432_v7  ;;  %v1082_v26 = vpop.eup %1081 }
 0x378   :  { %v714_v36 = vmul.f32 %v1082_v26, %v1428_v0  ;;  %v687_v63 = vpop.xlane.xlu1 %686 }
 0x379   :  { %v731_v56 = vpack.c.bf16 %v717_v55, %v716_v53 }
 0x37a   :  { %v1084_v59 = vpop.eup %1083 }
 0x37b   :  { %v715_v52 = vmul.f32 %v1084_v59, %v1440_v15  ;;  %v685_v1 = vpop.xlane.xlu0 %684 }
 0x37c   :  { %v683_v60 = vpop.xlane.xlu1 %682  ;;  %1091 = vrcp.f32 %v685_v1 }
 0x37d   :  { %v730_v34 = vpack.c.bf16 %v715_v52, %v714_v36  ;;  %1093 = vrcp.f32 %v683_v60 }
 0x37e   :  { %1095 = vrcp.f32 %v679_v61  ;;  %v1086_v2 = vpop.eup %1085 }
 0x37f   :  { %1015 = vmatprep.mubr.bf16.mxu0 %v730_v34  ;;  %v695_v3 = vpop.xlane.xlu0 %694  ;;  %v1088_v5 = vpop.eup %1087  ;;  %v719_v10 = vmul.f32 %v1086_v2, %v1448_v25 }
 0x380   :  { %v689_v4 = vpop.xlane.xlu1 %688  ;;  %v718_v13 = vmul.f32 %v1088_v5, %v1443_v18  ;;  %v1090_v14 = vpop.eup %1089 }
 0x381   :  { %1097 = vrcp.f32 %v689_v4  ;;  %v721_v21 = vmul.f32 %v1090_v14, %v1450_v27 }
 0x382   :  { %v732_v16 = vpack.c.bf16 %v719_v10, %v718_v13 }
 0x384   :  { %v691_v12 = vpop.xlane.xlu1 %690 }
 0x386   :  { %v1092_v15 = vpop.eup %1091 }
 0x387   :  { %v1094_v17 = vpop.eup %1093  ;;  %v723_v24 = vmul.f32 %v1092_v15, %v1457_v33 }
 0x388   :  { %v1096_v19 = vpop.eup %1095  ;;  %v722_v23 = vmul.f32 %v1094_v17, %v1459_v35 }
 0x389   :  { %v720_v25 = vmul.f32 %v1096_v19, %v1434_v9 }
 0x38a   :  { %v734_v22 = vpack.c.bf16 %v723_v24, %v722_v23 }
 0x38b   :  { %v733_v18 = vpack.c.bf16 %v721_v21, %v720_v25  ;;  %v1098_v28 = vpop.eup %1097 }
 0x38c   :  { %v725_v38 = vmul.f32 %v1098_v28, %v1465_v31 }
 0x3b4   :  { %v697_v20 = vpop.xlane.xlu1 %696 }
 0x3b8   :  { %v693_v0 = vpop.xlane.xlu0 %692 }
 0x3b9   :  { %1099 = vrcp.f32 %v693_v0 }
 0x3ba   :  { %1101 = vrcp.f32 %v687_v63 }
 0x3bb   :  { %1103 = vrcp.f32 %v691_v12 }
 0x3bc   :  { %v753_v7 = vpop.permute.xlu0 %752  ;;  %1105 = vrcp.f32 %v697_v20 }
 0x3bd   :  { %1013 = vmatprep.subr.bf16.mxu0 %v753_v7  ;;  %1107 = vrcp.f32 %v695_v3 }
 0x3be   :  { %1014 = vmatpush3.bf16.msra.mxu0 %v753_v7 }
 0x3c1   :  { %1016 = vmatmul.mubr.bf16.vlgmr.msra.gmra.mrb[16].mxu0 %v731_v56 }
 0x3c2   :  { %1019 = vmatprep.mubr.bf16.mxu0 %v732_v16 }
 0x3c3   :  { %v1100_v29 = vpop.eup %1099 }
 0x3c4   :  { %v1102_v32 = vpop.eup %1101  ;;  %v727_v27 = vmul.f32 %v1100_v29, %v1477_v48 }
 0x3c5   :  { %v1104_v37 = vpop.eup %1103  ;;  %v724_v35 = vmul.f32 %v1102_v32, %v1454_v30 }
 0x3c6   :  { %v726_v33 = vmul.f32 %v1104_v37, %v1469_v40  ;;  %v1106_v9 = vpop.eup %1105 }
 0x3c7   :  { %v735_v6 = vpack.c.bf16 %v725_v38, %v724_v35  ;;  %v1108_v42 = vpop.eup %1107  ;;  %v729_v11 = vmul.f32 %v1106_v9, %v1474_v46 }
 0x3c8   :  { %v736_v41 = vpack.c.bf16 %v727_v27, %v726_v33  ;;  %v728_v43 = vmul.f32 %v1108_v42, %v1463_v39 }
 0x3c9   :  { %1020 = vmatmul.mubr.bf16.gmra.mrb[20].mxu0 %v733_v18 }
 0x3ca   :  { %1023 = vmatprep.mubr.bf16.mxu0 %v734_v22  ;;  %v737_v8 = vpack.c.bf16 %v729_v11, %v728_v43 }
 0x3d1   :  { %1024 = vmatmul.mubr.bf16.gmra.mrb[24].mxu0 %v735_v6 }
 0x3d2   :  { %1027 = vmatprep.mubr.bf16.mxu0 %v736_v41 }
 0x3d9   :  { %1028 = vmatmul.mubr.bf16.gmra.mrb[28].mxu0 %v737_v8 }
 0x494   :  { %v1017_v44 = vpop.f32.mrb[16].mxu0 }
 0x495   :  { %861 = vst.msk [vmem:[%s1564_s2 + $0x10] sm:$0xff] %vm222_vm1, %v1017_v44  ;;  %v796_v30 = vpop.f32.mrb[17].mxu0 }
 0x496   :  { %859 = vst.msk [vmem:[%s1564_s2] sm:$0xff] %vm222_vm1, %v796_v30  ;;  %v1018_v31 = vpop.f32.mrb[18].mxu0 }
 0x497   :  { %862 = vst.msk [vmem:[%s1564_s2 + $0x18] sm:$0xff] %vm222_vm1, %v1018_v31  ;;  %v799_v39 = vpop.f32.mrb[19].mxu0 }
 0x498   :  { %860 = vst.msk [vmem:[%s1564_s2 + $0x8] sm:$0xff] %vm222_vm1, %v799_v39 }
 0x49c   :  { %v1021_v40 = vpop.f32.mrb[20].mxu0 }
 0x49d   :  { %865 = vst.msk [vmem:[%s1564_s2 + $0x30] sm:$0xff] %vm222_vm1, %v1021_v40  ;;  %v812_v46 = vpop.f32.mrb[21].mxu0 }
 0x49e   :  { %863 = vst.msk [vmem:[%s1564_s2 + $0x20] sm:$0xff] %vm222_vm1, %v812_v46  ;;  %v1022_v48 = vpop.f32.mrb[22].mxu0 }
 0x49f   :  { %866 = vst.msk [vmem:[%s1564_s2 + $0x38] sm:$0xff] %vm222_vm1, %v1022_v48  ;;  %v815_v47 = vpop.f32.mrb[23].mxu0 }
 0x4a0   :  { %864 = vst.msk [vmem:[%s1564_s2 + $0x28] sm:$0xff] %vm222_vm1, %v815_v47 }
 0x4a4   :  { %v1025_v54 = vpop.f32.mrb[24].mxu0 }
 0x4a5   :  { %869 = vst.msk [vmem:[%s1564_s2 + $0x50] sm:$0xff] %vm222_vm1, %v1025_v54  ;;  %v828_v49 = vpop.f32.mrb[25].mxu0 }
 0x4a6   :  { %867 = vst.msk [vmem:[%s1564_s2 + $0x40] sm:$0xff] %vm222_vm1, %v828_v49  ;;  %v1026_v50 = vpop.f32.mrb[26].mxu0 }
 0x4a7   :  { %870 = vst.msk [vmem:[%s1564_s2 + $0x58] sm:$0xff] %vm222_vm1, %v1026_v50  ;;  %v831_v51 = vpop.f32.mrb[27].mxu0 }
 0x4a8   :  { %868 = vst.msk [vmem:[%s1564_s2 + $0x48] sm:$0xff] %vm222_vm1, %v831_v51 }
 0x4ac   :  { %v1029_v45 = vpop.f32.mrb[28].mxu0 }
 0x4ad   :  { %873 = vst.msk [vmem:[%s1564_s2 + $0x70] sm:$0xff] %vm222_vm1, %v1029_v45  ;;  %v844_v53 = vpop.f32.mrb[29].mxu0 }
 0x4ae   :  { %871 = vst.msk [vmem:[%s1564_s2 + $0x60] sm:$0xff] %vm222_vm1, %v844_v53  ;;  %v1030_v55 = vpop.f32.mrb[30].mxu0 }
 0x4af   :  { %874 = vst.msk [vmem:[%s1564_s2 + $0x78] sm:$0xff] %vm222_vm1, %v1030_v55  ;;  %v847_v26 = vpop.f32.mrb[31].mxu0 }
 0x4b0   :  { %872 = vst.msk [vmem:[%s1564_s2 + $0x68] sm:$0xff] %vm222_vm1, %v847_v26 }

</bundles_post_ra>
